<compile_context>
chip_gen: v6e
topology: v6e:2x2x1
jax: 0.10.0
libtpu: 0.0.40
codegen_flags: <defaults>
</compile_context>

<pallas_src>
import jax
import jax.numpy as jnp
import numpy as np
from jax import lax
from jax.experimental import pallas as pl
from jax.experimental.pallas import tpu as pltpu


def _round_up(x, m):
    return ((x + m - 1) // m) * m


# ----------------------------------------------------------------------------
# Feature probe: sublane-strided lane roll support + stride sign convention.
# Returns +1/-1 = stride to pass so sublane r is lane-rolled right by r
# (out[r, j] = in[r, (j - r) % L]), or None if strided rolls do not lower.
# ----------------------------------------------------------------------------
_STRIDED_ROLL_SIGN = "unprobed"


def _probe_strided_roll():
    def kernel(x_ref, o_ref):
        o_ref[...] = pltpu.roll(x_ref[...], 0, 1, stride=1, stride_axis=0)

    try:
        base = np.arange(128, dtype=np.float32)
        x = jnp.broadcast_to(jnp.asarray(base), (8, 128))
        out = pl.pallas_call(
            kernel, out_shape=jax.ShapeDtypeStruct((8, 128), jnp.float32))(x)
        out = np.asarray(jax.block_until_ready(out))
    except Exception:
        return None
    if np.array_equal(out[1], np.roll(base, 1)):
        return 1          # row r rolled by +r with stride=+1
    if np.array_equal(out[1], np.roll(base, -1)):
        return -1         # opposite convention: pass stride=-1 for +r
    return None


def _strided_roll_sign():
    global _STRIDED_ROLL_SIGN
    if _STRIDED_ROLL_SIGN == "unprobed":
        _STRIDED_ROLL_SIGN = _probe_strided_roll()
    return _STRIDED_ROLL_SIGN


# ----------------------------------------------------------------------------
# Row-tile selection: largest divisor of n (multiple of 8, <=256) whose
# double-buffered output block + roll temporaries fit a VMEM budget that is
# safe on all generations (v7x has only 64 MiB physical VMEM).
# ----------------------------------------------------------------------------
def _pick_row_tile(n, heads, out_itemsize, l_pad, max_tile=256,
                   vmem_budget=12 << 20):
    best = None
    for t in (8, 16, 32, 64, 128, 256):
        if t > max_tile or n % t != 0:
            continue
        out_bytes = 2 * heads * t * n * out_itemsize   # double-buffered output
        tmp_bytes = 3 * t * l_pad * 4                  # slab + rolled temps
        if out_bytes + tmp_bytes <= vmem_budget:
            best = t
    if best is None:
        best = 8 if n % 8 == 0 else n                  # tiny / odd n fallback
    return best


# ----------------------------------------------------------------------------
# Kernel
# ----------------------------------------------------------------------------
def _make_dpb_kernel(n, dim, heads, depth, log_distance, tile_i, l_pad,
                     stride_sign):
    def kernel(*refs):
        out_ref = refs[-1]          # (heads, tile_i, n) output block
        wrefs = refs[:-1]           # MLP parameters (full arrays in VMEM)

        # ---- Tiny MLP, recomputed every grid step (cheap; enables "parallel"
        # grid semantics).  Evaluated in (channels, position) lane-major
        # layout with positions ordered so q[h, k] = MLP(n - 1 - k)[h]; then
        # bias[h, i, j] = q[h, (n - 1 - i) + j].
        k = lax.broadcasted_iota(jnp.int32, (1, l_pad), 1)
        pos = jnp.float32(n - 1) - k.astype(jnp.float32)           # (1, l_pad)
        if log_distance:
            pos = jnp.sign(pos) * jnp.log(jnp.abs(pos) + 1.0)

        w0 = wrefs[0][...]                                         # (dim, 1)
        b0 = wrefs[1][...]                                         # (dim, 1)
        h = jnp.maximum(w0 * pos + b0, 0.0)                        # (dim, l_pad)
        # TODO(synk): norm=True (LayerNorm before ReLU) not implemented.

        for d in range(depth - 1):
            w = wrefs[2 + 2 * d][...]                              # (dim, dim)
            b = wrefs[3 + 2 * d][...]                              # (dim, 1)
            h = jnp.maximum(
                jnp.dot(w, h, preferred_element_type=jnp.float32) + b, 0.0)

        w_out = wrefs[2 * depth][...]                              # (heads, dim)
        b_out = wrefs[2 * depth + 1][...]                          # (heads, 1)
        q = jnp.dot(w_out, h, preferred_element_type=jnp.float32) + b_out
        # q: (heads, l_pad).  Lanes >= 2n-1 hold junk but are never read below.

        # ---- Toeplitz expansion of this row tile with dense stores.
        # Row i needs q[h, (n-1-i) : (n-1-i)+n].
        i0 = pl.program_id(0) * tile_i
        c0 = n - 1 - i0                                 # first row's window start
        # Step 1: align lane 0 with the first row's window (one dynamic roll).
        q_a = pltpu.roll(q, (l_pad - c0) % l_pad, 1)    # q_a[h,k]=q[h,(c0+k)%l_pad]

        for hh in range(heads):                         # heads is small & static
            slab = jnp.broadcast_to(q_a[hh:hh + 1, :], (tile_i, l_pad))
            if stride_sign is not None:
                # Step 2: one XLU op per head: sublane r lane-rolled by +r, so
                # rolled[r, j] = q[h, (c0 + j - r) % l_pad] = bias[h, i0+r, j].
                rolled = pltpu.roll(slab, 0, 1,
                                    stride=stride_sign, stride_axis=0)
            else:
                # Fallback: barrel shifter (log2(tile_i) static rolls+selects)
                # producing the same per-row shifts.
                row = lax.broadcasted_iota(jnp.int32, (tile_i, l_pad), 0)
                rolled = slab
                bit = 1
                while bit < tile_i:
                    shifted = pltpu.roll(rolled, bit, 1)
                    rolled = jnp.where((row & bit) != 0, shifted, rolled)
                    bit *= 2
            # Lane-dense (tile_i, n) store.
            out_ref[hh, :, :] = rolled[:, :n].astype(out_ref.dtype)

    return kernel


# ----------------------------------------------------------------------------
# Wrapper
# ----------------------------------------------------------------------------
def dynamic_position_bias(n, params, *, dim, heads, depth, log_distance=False,
                          dtype=jnp.float32, row_tile=None):
    """params: [W0 (dim,1), b0 (dim,1), (W (dim,dim), b (dim,1)) * (depth-1),
    W_out (heads,dim), b_out (heads,1)] in PyTorch (out, in) layout.
    Returns bias of shape (heads, n, n)."""
    assert depth >= 1
    assert len(params) == 2 * (depth + 1)

    l_pad = _round_up(2 * n - 1, 128)          # lane-padded MLP position count
    out_itemsize = np.dtype(dtype).itemsize
    if row_tile is None:
        tile_i = _pick_row_tile(n, heads, out_itemsize, l_pad)
    else:
        tile_i = row_tile
    assert n % tile_i == 0, (n, tile_i)
    grid = (n // tile_i,)

    stride_sign = _strided_roll_sign()
    kernel = _make_dpb_kernel(n, dim, heads, depth, log_distance, tile_i,
                              l_pad, stride_sign)

    out = pl.pallas_call(
        kernel,
        out_shape=jax.ShapeDtypeStruct((heads, n, n), dtype),
        grid_spec=pltpu.PrefetchScalarGridSpec(
            num_scalar_prefetch=0,
            grid=grid,
            in_specs=[pl.BlockSpec(memory_space=pltpu.MemorySpace.VMEM)]
                     * len(params),
            out_specs=pl.BlockSpec((heads, tile_i, n), lambda t: (0, t, 0)),
        ),
        compiler_params=pltpu.CompilerParams(
            dimension_semantics=("parallel",),
            vmem_limit_bytes=32 * 1024 * 1024),
    )(*params)
    return out


# ----------------------------------------------------------------------------
# Pure-JAX reference mirroring the PyTorch forward, and param init.
# ----------------------------------------------------------------------------
def _reference(n, params, *, depth, log_distance=False, dtype=jnp.float32):
    L = 2 * n - 1
    pos = jnp.arange(-n + 1, n, dtype=dtype).reshape(L, 1)
    if log_distance:
        pos = jnp.sign(pos) * jnp.log(jnp.abs(pos) + 1.0)
    x = pos
    for d in range(depth):
        w, b = params[2 * d], params[2 * d + 1]        # (out, in), (out, 1)
        x = jax.nn.relu(x @ w.T + b.T)
    w_out, b_out = params[2 * depth], params[2 * depth + 1]
    p = x @ w_out.T + b_out.T                          # (L, heads)
    i = jnp.arange(n)[:, None]
    j = jnp.arange(n)[None, :]
    indices = i - j + n - 1
    bias = p[indices]                                  # (n, n, heads)
    return jnp.transpose(bias, (2, 0, 1))              # (heads, n, n)


def init_params(key, *, dim, heads, depth, dtype=jnp.float32):
    keys = jax.random.split(key, 2 * (depth + 1))
    params = []
    params.append(0.1 * jax.random.normal(keys[0], (dim, 1), dtype))   # Linear(1, dim)
    params.append(0.1 * jax.random.normal(keys[1], (dim, 1), dtype))
    for d in range(depth - 1):                                         # Linear(dim, dim)
        params.append(0.1 * jax.random.normal(keys[2 + 2 * d], (dim, dim), dtype))
        params.append(0.1 * jax.random.normal(keys[3 + 2 * d], (dim, 1), dtype))
    params.append(0.1 * jax.random.normal(keys[2 * depth], (heads, dim), dtype))   # Linear(dim, heads)
    params.append(0.1 * jax.random.normal(keys[2 * depth + 1], (heads, 1), dtype))
    return params


if __name__ == "__main__":
    key = jax.random.PRNGKey(0)

    configs = [
        # small toy config (single grid step)
        dict(n=8, dim=32, heads=4, depth=2, log_distance=False, row_tile=None),
        # lane-dense config exercising multiple grid steps
        dict(n=128, dim=32, heads=4, depth=2, log_distance=True, row_tile=32),
    ]
    for cfg in configs:
        params = init_params(key, dim=cfg["dim"], heads=cfg["heads"],
                             depth=cfg["depth"])
        bias = dynamic_position_bias(cfg["n"], params, dim=cfg["dim"],
                                     heads=cfg["heads"], depth=cfg["depth"],
                                     log_distance=cfg["log_distance"],
                                     row_tile=cfg["row_tile"])
        bias = jax.block_until_ready(bias)

        ref = _reference(cfg["n"], params, depth=cfg["depth"],
                         log_distance=cfg["log_distance"])
        assert bias.shape == (cfg["heads"], cfg["n"], cfg["n"]), bias.shape
        np.testing.assert_allclose(np.asarray(bias), np.asarray(ref),
                                   rtol=1e-4, atol=1e-4)

    print("KERNEL_OK")
</pallas_src>

<mosaic_0001>
module attributes {stable_mosaic.version = 11 : i64} {
  func.func @kernel(%arg0: memref<8x128xf32, #tpu.memory_space<vmem>>, %arg1: memref<8x128xf32, #tpu.memory_space<vmem>>) attributes {dimension_semantics = [], scalar_prefetch = 0 : i64, scratch_operands = 0 : i64, tpu.core_type = #tpu.core_type<tc>} {
    %c0 = arith.constant 0 : index
    %c0_0 = arith.constant 0 : index
    %0 = vector.load %arg0[%c0, %c0_0] : memref<8x128xf32, #tpu.memory_space<vmem>>, vector<8x128xf32>
    %c0_i32 = arith.constant 0 : i32
    %1 = tpu.dynamic_rotate %0 by %c0_i32 dim 1 {stride = 1 : si32, stride_dimension = 0 : si32} : vector<8x128xf32>, i32 -> vector<8x128xf32>
    %c0_1 = arith.constant 0 : index
    %c0_2 = arith.constant 0 : index
    %2 = vector.load %arg1[%c0_1, %c0_2] : memref<8x128xf32, #tpu.memory_space<vmem>>, vector<8x128xf32>
    tpu.vector_store %arg1[%c0_1, %c0_2], %1 {strides = array<i32>} : memref<8x128xf32, #tpu.memory_space<vmem>>, vector<8x128xf32>,
    return
  }
}

module attributes {stable_mosaic.version = 11 : i64} {
  func.func @kernel(%arg0: i32, %arg1: memref<32x1xf32, #tpu.memory_space<vmem>>, %arg2: memref<32x1xf32, #tpu.memory_space<vmem>>, %arg3: memref<32x32xf32, #tpu.memory_space<vmem>>, %arg4: memref<32x1xf32, #tpu.memory_space<vmem>>, %arg5: memref<4x32xf32, #tpu.memory_space<vmem>>, %arg6: memref<4x1xf32, #tpu.memory_space<vmem>>, %arg7: memref<4x8x8xf32, #tpu.memory_space<vmem>>) attributes {dimension_semantics = [#tpu.dimension_semantics<parallel>], iteration_bounds = array<i64: 1>, scalar_prefetch = 0 : i64, scratch_operands = 0 : i64, tpu.core_type = #tpu.core_type<tc>, window_params = [{pipeline_mode = #tpu.pipeline_mode<synchronous>, transform_indices = @transform_0, window_bounds = array<i64: 32, 1>}, {pipeline_mode = #tpu.pipeline_mode<synchronous>, transform_indices = @transform_1, window_bounds = array<i64: 32, 1>}, {pipeline_mode = #tpu.pipeline_mode<synchronous>, transform_indices = @transform_2, window_bounds = array<i64: 32, 32>}, {pipeline_mode = #tpu.pipeline_mode<synchronous>, transform_indices = @transform_3, window_bounds = array<i64: 32, 1>}, {pipeline_mode = #tpu.pipeline_mode<synchronous>, transform_indices = @transform_4, window_bounds = array<i64: 4, 32>}, {pipeline_mode = #tpu.pipeline_mode<synchronous>, transform_indices = @transform_5, window_bounds = array<i64: 4, 1>}, {transform_indices = @transform_6, window_bounds = array<i64: 4, 8, 8>}]} {
    %0 = tpu.iota {dimensions = array<i32: 1>} : vector<1x128xi32>
    %1 = arith.sitofp %0 : vector<1x128xi32> to vector<1x128xf32>
    %cst = arith.constant 7.000000e+00 : f32
    %2 = vector.broadcast %cst : f32 to vector<1x128xf32>
    %3 = arith.subf %2, %1 : vector<1x128xf32>
    %c0 = arith.constant 0 : index
    %c0_0 = arith.constant 0 : index
    %4 = vector.load %arg1[%c0, %c0_0] : memref<32x1xf32, #tpu.memory_space<vmem>>, vector<32x1xf32>
    %c0_1 = arith.constant 0 : index
    %c0_2 = arith.constant 0 : index
    %5 = vector.load %arg2[%c0_1, %c0_2] : memref<32x1xf32, #tpu.memory_space<vmem>>, vector<32x1xf32>
    %6 = vector.broadcast %4 : vector<32x1xf32> to vector<32x128xf32>
    %7 = vector.broadcast %3 : vector<1x128xf32> to vector<32x128xf32>
    %8 = arith.mulf %6, %7 : vector<32x128xf32>
    %9 = vector.broadcast %5 : vector<32x1xf32> to vector<32x128xf32>
    %10 = arith.addf %8, %9 : vector<32x128xf32>
    %cst_3 = arith.constant 0.000000e+00 : f32
    %11 = vector.broadcast %cst_3 : f32 to vector<32x128xf32>
    %12 = arith.maximumf %10, %11 : vector<32x128xf32>
    %c0_4 = arith.constant 0 : index
    %c0_5 = arith.constant 0 : index
    %13 = vector.load %arg3[%c0_4, %c0_5] : memref<32x32xf32, #tpu.memory_space<vmem>>, vector<32x32xf32>
    %c0_6 = arith.constant 0 : index
    %c0_7 = arith.constant 0 : index
    %14 = vector.load %arg4[%c0_6, %c0_7] : memref<32x1xf32, #tpu.memory_space<vmem>>, vector<32x1xf32>
    %cst_8 = arith.constant dense<0.000000e+00> : vector<32x128xf32>
    %15 = tpu.matmul %13, %12, %cst_8 {dimension_numbers = #tpu.dot_dimension_numbers<[1], [0], [0], [1], [0, 0, 1, 1], [], []>} : vector<32x32xf32>, vector<32x128xf32>, vector<32x128xf32> -> vector<32x128xf32>
    %16 = vector.broadcast %14 : vector<32x1xf32> to vector<32x128xf32>
    %17 = arith.addf %15, %16 : vector<32x128xf32>
    %cst_9 = arith.constant 0.000000e+00 : f32
    %18 = vector.broadcast %cst_9 : f32 to vector<32x128xf32>
    %19 = arith.maximumf %17, %18 : vector<32x128xf32>
    %c0_10 = arith.constant 0 : index
    %c0_11 = arith.constant 0 : index
    %20 = vector.load %arg5[%c0_10, %c0_11] : memref<4x32xf32, #tpu.memory_space<vmem>>, vector<4x32xf32>
    %c0_12 = arith.constant 0 : index
    %c0_13 = arith.constant 0 : index
    %21 = vector.load %arg6[%c0_12, %c0_13] : memref<4x1xf32, #tpu.memory_space<vmem>>, vector<4x1xf32>
    %cst_14 = arith.constant dense<0.000000e+00> : vector<4x128xf32>
    %22 = tpu.matmul %20, %19, %cst_14 {dimension_numbers = #tpu.dot_dimension_numbers<[1], [0], [0], [1], [0, 0, 1, 1], [], []>} : vector<4x32xf32>, vector<32x128xf32>, vector<4x128xf32> -> vector<4x128xf32>
    %23 = vector.broadcast %21 : vector<4x1xf32> to vector<4x128xf32>
    %24 = arith.addf %22, %23 : vector<4x128xf32>
    %c8_i32 = arith.constant 8 : i32
    %25 = arith.muli %arg0, %c8_i32 : i32
    %c7_i32 = arith.constant 7 : i32
    %26 = arith.subi %c7_i32, %25 : i32
    %c128_i32 = arith.constant 128 : i32
    %27 = arith.subi %c128_i32, %26 : i32
    %c128_i32_15 = arith.constant 128 : i32
    %c0_i32 = arith.constant 0 : i32
    %28 = arith.cmpi eq, %c128_i32_15, %c0_i32 : i32
    %c1_i32 = arith.constant 1 : i32
    %29 = arith.select %28, %c1_i32, %c128_i32_15 : i32
    %30 = arith.remsi %27, %29 : i32
    %c0_i32_16 = arith.constant 0 : i32
    %31 = arith.cmpi ne, %30, %c0_i32_16 : i32
    %c0_i32_17 = arith.constant 0 : i32
    %32 = arith.cmpi slt, %30, %c0_i32_17 : i32
    %c0_i32_18 = arith.constant 0 : i32
    %33 = arith.cmpi slt, %29, %c0_i32_18 : i32
    %34 = arith.xori %32, %33 : i1
    %35 = arith.andi %34, %31 : i1
    %36 = arith.addi %30, %29 : i32
    %37 = arith.select %35, %36, %30 : i32
    %38 = tpu.dynamic_rotate %24 by %37 dim 1 : vector<4x128xf32>, i32 -> vector<4x128xf32>
    %39 = vector.extract_strided_slice %38 {offsets = [0, 0], sizes = [1, 128], strides = [1, 1]} : vector<4x128xf32> to vector<1x128xf32>
    %40 = vector.shape_cast %39 : vector<1x128xf32> to vector<1x128xf32>
    %41 = vector.broadcast %40 : vector<1x128xf32> to vector<8x128xf32>
    %42 = tpu.iota {dimensions = array<i32: 0>} : vector<8x128xi32>
    %c1_i32_19 = arith.constant 1 : i32
    %43 = tpu.dynamic_rotate %41 by %c1_i32_19 dim 1 : vector<8x128xf32>, i32 -> vector<8x128xf32>
    %c1_i32_20 = arith.constant 1 : i32
    %44 = vector.broadcast %c1_i32_20 : i32 to vector<8x128xi32>
    %45 = arith.andi %42, %44 : vector<8x128xi32>
    %c0_i32_21 = arith.constant 0 : i32
    %46 = vector.broadcast %c0_i32_21 : i32 to vector<8x128xi32>
    %47 = arith.cmpi ne, %45, %46 : vector<8x128xi32>
    %48 = arith.select %47, %43, %41 : vector<8x128xi1>, vector<8x128xf32>
    %c2_i32 = arith.constant 2 : i32
    %49 = tpu.dynamic_rotate %48 by %c2_i32 dim 1 : vector<8x128xf32>, i32 -> vector<8x128xf32>
    %c2_i32_22 = arith.constant 2 : i32
    %50 = vector.broadcast %c2_i32_22 : i32 to vector<8x128xi32>
    %51 = arith.andi %42, %50 : vector<8x128xi32>
    %c0_i32_23 = arith.constant 0 : i32
    %52 = vector.broadcast %c0_i32_23 : i32 to vector<8x128xi32>
    %53 = arith.cmpi ne, %51, %52 : vector<8x128xi32>
    %54 = arith.select %53, %49, %48 : vector<8x128xi1>, vector<8x128xf32>
    %c4_i32 = arith.constant 4 : i32
    %55 = tpu.dynamic_rotate %54 by %c4_i32 dim 1 : vector<8x128xf32>, i32 -> vector<8x128xf32>
    %c4_i32_24 = arith.constant 4 : i32
    %56 = vector.broadcast %c4_i32_24 : i32 to vector<8x128xi32>
    %57 = arith.andi %42, %56 : vector<8x128xi32>
    %c0_i32_25 = arith.constant 0 : i32
    %58 = vector.broadcast %c0_i32_25 : i32 to vector<8x128xi32>
    %59 = arith.cmpi ne, %57, %58 : vector<8x128xi32>
    %60 = arith.select %59, %55, %54 : vector<8x128xi1>, vector<8x128xf32>
    %61 = vector.extract_strided_slice %60 {offsets = [0, 0], sizes = [8, 8], strides = [1, 1]} : vector<8x128xf32> to vector<8x8xf32>
    %c0_26 = arith.constant 0 : index
    %c0_27 = arith.constant 0 : index
    %c0_28 = arith.constant 0 : index
    %62 = vector.load %arg7[%c0_26, %c0_27, %c0_28] : memref<4x8x8xf32, #tpu.memory_space<vmem>>, vector<1x8x8xf32>
    %63 = vector.shape_cast %62 : vector<1x8x8xf32> to vector<8x8xf32>
    %64 = vector.shape_cast %61 : vector<8x8xf32> to vector<1x8x8xf32>
    tpu.vector_store %arg7[%c0_26, %c0_27, %c0_28], %64 {strides = array<i32>} : memref<4x8x8xf32, #tpu.memory_space<vmem>>, vector<1x8x8xf32>,
    %65 = vector.extract_strided_slice %38 {offsets = [1, 0], sizes = [1, 128], strides = [1, 1]} : vector<4x128xf32> to vector<1x128xf32>
    %66 = vector.shape_cast %65 : vector<1x128xf32> to vector<1x128xf32>
    %67 = vector.broadcast %66 : vector<1x128xf32> to vector<8x128xf32>
    %68 = tpu.iota {dimensions = array<i32: 0>} : vector<8x128xi32>
    %c1_i32_29 = arith.constant 1 : i32
    %69 = tpu.dynamic_rotate %67 by %c1_i32_29 dim 1 : vector<8x128xf32>, i32 -> vector<8x128xf32>
    %c1_i32_30 = arith.constant 1 : i32
    %70 = vector.broadcast %c1_i32_30 : i32 to vector<8x128xi32>
    %71 = arith.andi %68, %70 : vector<8x128xi32>
    %c0_i32_31 = arith.constant 0 : i32
    %72 = vector.broadcast %c0_i32_31 : i32 to vector<8x128xi32>
    %73 = arith.cmpi ne, %71, %72 : vector<8x128xi32>
    %74 = arith.select %73, %69, %67 : vector<8x128xi1>, vector<8x128xf32>
    %c2_i32_32 = arith.constant 2 : i32
    %75 = tpu.dynamic_rotate %74 by %c2_i32_32 dim 1 : vector<8x128xf32>, i32 -> vector<8x128xf32>
    %c2_i32_33 = arith.constant 2 : i32
    %76 = vector.broadcast %c2_i32_33 : i32 to vector<8x128xi32>
    %77 = arith.andi %68, %76 : vector<8x128xi32>
    %c0_i32_34 = arith.constant 0 : i32
    %78 = vector.broadcast %c0_i32_34 : i32 to vector<8x128xi32>
    %79 = arith.cmpi ne, %77, %78 : vector<8x128xi32>
    %80 = arith.select %79, %75, %74 : vector<8x128xi1>, vector<8x128xf32>
    %c4_i32_35 = arith.constant 4 : i32
    %81 = tpu.dynamic_rotate %80 by %c4_i32_35 dim 1 : vector<8x128xf32>, i32 -> vector<8x128xf32>
    %c4_i32_36 = arith.constant 4 : i32
    %82 = vector.broadcast %c4_i32_36 : i32 to vector<8x128xi32>
    %83 = arith.andi %68, %82 : vector<8x128xi32>
    %c0_i32_37 = arith.constant 0 : i32
    %84 = vector.broadcast %c0_i32_37 : i32 to vector<8x128xi32>
    %85 = arith.cmpi ne, %83, %84 : vector<8x128xi32>
    %86 = arith.select %85, %81, %80 : vector<8x128xi1>, vector<8x128xf32>
    %87 = vector.extract_strided_slice %86 {offsets = [0, 0], sizes = [8, 8], strides = [1, 1]} : vector<8x128xf32> to vector<8x8xf32>
    %c1 = arith.constant 1 : index
    %c0_38 = arith.constant 0 : index
    %c0_39 = arith.constant 0 : index
    %88 = vector.load %arg7[%c1, %c0_38, %c0_39] : memref<4x8x8xf32, #tpu.memory_space<vmem>>, vector<1x8x8xf32>
    %89 = vector.shape_cast %88 : vector<1x8x8xf32> to vector<8x8xf32>
    %90 = vector.shape_cast %87 : vector<8x8xf32> to vector<1x8x8xf32>
    tpu.vector_store %arg7[%c1, %c0_38, %c0_39], %90 {strides = array<i32>} : memref<4x8x8xf32, #tpu.memory_space<vmem>>, vector<1x8x8xf32>,
    %91 = vector.extract_strided_slice %38 {offsets = [2, 0], sizes = [1, 128], strides = [1, 1]} : vector<4x128xf32> to vector<1x128xf32>
    %92 = vector.shape_cast %91 : vector<1x128xf32> to vector<1x128xf32>
    %93 = vector.broadcast %92 : vector<1x128xf32> to vector<8x128xf32>
    %94 = tpu.iota {dimensions = array<i32: 0>} : vector<8x128xi32>
    %c1_i32_40 = arith.constant 1 : i32
    %95 = tpu.dynamic_rotate %93 by %c1_i32_40 dim 1 : vector<8x128xf32>, i32 -> vector<8x128xf32>
    %c1_i32_41 = arith.constant 1 : i32
    %96 = vector.broadcast %c1_i32_41 : i32 to vector<8x128xi32>
    %97 = arith.andi %94, %96 : vector<8x128xi32>
    %c0_i32_42 = arith.constant 0 : i32
    %98 = vector.broadcast %c0_i32_42 : i32 to vector<8x128xi32>
    %99 = arith.cmpi ne, %97, %98 : vector<8x128xi32>
    %100 = arith.select %99, %95, %93 : vector<8x128xi1>, vector<8x128xf32>
    %c2_i32_43 = arith.constant 2 : i32
    %101 = tpu.dynamic_rotate %100 by %c2_i32_43 dim 1 : vector<8x128xf32>, i32 -> vector<8x128xf32>
    %c2_i32_44 = arith.constant 2 : i32
    %102 = vector.broadcast %c2_i32_44 : i32 to vector<8x128xi32>
    %103 = arith.andi %94, %102 : vector<8x128xi32>
    %c0_i32_45 = arith.constant 0 : i32
    %104 = vector.broadcast %c0_i32_45 : i32 to vector<8x128xi32>
    %105 = arith.cmpi ne, %103, %104 : vector<8x128xi32>
    %106 = arith.select %105, %101, %100 : vector<8x128xi1>, vector<8x128xf32>
    %c4_i32_46 = arith.constant 4 : i32
    %107 = tpu.dynamic_rotate %106 by %c4_i32_46 dim 1 : vector<8x128xf32>, i32 -> vector<8x128xf32>
    %c4_i32_47 = arith.constant 4 : i32
    %108 = vector.broadcast %c4_i32_47 : i32 to vector<8x128xi32>
    %109 = arith.andi %94, %108 : vector<8x128xi32>
    %c0_i32_48 = arith.constant 0 : i32
    %110 = vector.broadcast %c0_i32_48 : i32 to vector<8x128xi32>
    %111 = arith.cmpi ne, %109, %110 : vector<8x128xi32>
    %112 = arith.select %111, %107, %106 : vector<8x128xi1>, vector<8x128xf32>
    %113 = vector.extract_strided_slice %112 {offsets = [0, 0], sizes = [8, 8], strides = [1, 1]} : vector<8x128xf32> to vector<8x8xf32>
    %c2 = arith.constant 2 : index
    %c0_49 = arith.constant 0 : index
    %c0_50 = arith.constant 0 : index
    %114 = vector.load %arg7[%c2, %c0_49, %c0_50] : memref<4x8x8xf32, #tpu.memory_space<vmem>>, vector<1x8x8xf32>
    %115 = vector.shape_cast %114 : vector<1x8x8xf32> to vector<8x8xf32>
    %116 = vector.shape_cast %113 : vector<8x8xf32> to vector<1x8x8xf32>
    tpu.vector_store %arg7[%c2, %c0_49, %c0_50], %116 {strides = array<i32>} : memref<4x8x8xf32, #tpu.memory_space<vmem>>, vector<1x8x8xf32>,
    %117 = vector.extract_strided_slice %38 {offsets = [3, 0], sizes = [1, 128], strides = [1, 1]} : vector<4x128xf32> to vector<1x128xf32>
    %118 = vector.shape_cast %117 : vector<1x128xf32> to vector<1x128xf32>
    %119 = vector.broadcast %118 : vector<1x128xf32> to vector<8x128xf32>
    %120 = tpu.iota {dimensions = array<i32: 0>} : vector<8x128xi32>
    %c1_i32_51 = arith.constant 1 : i32
    %121 = tpu.dynamic_rotate %119 by %c1_i32_51 dim 1 : vector<8x128xf32>, i32 -> vector<8x128xf32>
    %c1_i32_52 = arith.constant 1 : i32
    %122 = vector.broadcast %c1_i32_52 : i32 to vector<8x128xi32>
    %123 = arith.andi %120, %122 : vector<8x128xi32>
    %c0_i32_53 = arith.constant 0 : i32
    %124 = vector.broadcast %c0_i32_53 : i32 to vector<8x128xi32>
    %125 = arith.cmpi ne, %123, %124 : vector<8x128xi32>
    %126 = arith.select %125, %121, %119 : vector<8x128xi1>, vector<8x128xf32>
    %c2_i32_54 = arith.constant 2 : i32
    %127 = tpu.dynamic_rotate %126 by %c2_i32_54 dim 1 : vector<8x128xf32>, i32 -> vector<8x128xf32>
    %c2_i32_55 = arith.constant 2 : i32
    %128 = vector.broadcast %c2_i32_55 : i32 to vector<8x128xi32>
    %129 = arith.andi %120, %128 : vector<8x128xi32>
    %c0_i32_56 = arith.constant 0 : i32
    %130 = vector.broadcast %c0_i32_56 : i32 to vector<8x128xi32>
    %131 = arith.cmpi ne, %129, %130 : vector<8x128xi32>
    %132 = arith.select %131, %127, %126 : vector<8x128xi1>, vector<8x128xf32>
    %c4_i32_57 = arith.constant 4 : i32
    %133 = tpu.dynamic_rotate %132 by %c4_i32_57 dim 1 : vector<8x128xf32>, i32 -> vector<8x128xf32>
    %c4_i32_58 = arith.constant 4 : i32
    %134 = vector.broadcast %c4_i32_58 : i32 to vector<8x128xi32>
    %135 = arith.andi %120, %134 : vector<8x128xi32>
    %c0_i32_59 = arith.constant 0 : i32
    %136 = vector.broadcast %c0_i32_59 : i32 to vector<8x128xi32>
    %137 = arith.cmpi ne, %135, %136 : vector<8x128xi32>
    %138 = arith.select %137, %133, %132 : vector<8x128xi1>, vector<8x128xf32>
    %139 = vector.extract_strided_slice %138 {offsets = [0, 0], sizes = [8, 8], strides = [1, 1]} : vector<8x128xf32> to vector<8x8xf32>
    %c3 = arith.constant 3 : index
    %c0_60 = arith.constant 0 : index
    %c0_61 = arith.constant 0 : index
    %140 = vector.load %arg7[%c3, %c0_60, %c0_61] : memref<4x8x8xf32, #tpu.memory_space<vmem>>, vector<1x8x8xf32>
    %141 = vector.shape_cast %140 : vector<1x8x8xf32> to vector<8x8xf32>
    %142 = vector.shape_cast %139 : vector<8x8xf32> to vector<1x8x8xf32>
    tpu.vector_store %arg7[%c3, %c0_60, %c0_61], %142 {strides = array<i32>} : memref<4x8x8xf32, #tpu.memory_space<vmem>>, vector<1x8x8xf32>,
    return
  }
  func.func @transform_0(%arg0: i32) -> (i32, i32) {
    %c0_i32 = arith.constant 0 : i32
    %c0_i32_0 = arith.constant 0 : i32
    %c0_i32_1 = arith.constant 0 : i32
    return %c0_i32, %c0_i32_0 : i32, i32
  }
  func.func @transform_1(%arg0: i32) -> (i32, i32) {
    %c0_i32 = arith.constant 0 : i32
    %c0_i32_0 = arith.constant 0 : i32
    %c0_i32_1 = arith.constant 0 : i32
    return %c0_i32, %c0_i32_0 : i32, i32
  }
  func.func @transform_2(%arg0: i32) -> (i32, i32) {
    %c0_i32 = arith.constant 0 : i32
    %c0_i32_0 = arith.constant 0 : i32
    %c0_i32_1 = arith.constant 0 : i32
    return %c0_i32, %c0_i32_0 : i32, i32
  }
  func.func @transform_3(%arg0: i32) -> (i32, i32) {
    %c0_i32 = arith.constant 0 : i32
    %c0_i32_0 = arith.constant 0 : i32
    %c0_i32_1 = arith.constant 0 : i32
    return %c0_i32, %c0_i32_0 : i32, i32
  }
  func.func @transform_4(%arg0: i32) -> (i32, i32) {
    %c0_i32 = arith.constant 0 : i32
    %c0_i32_0 = arith.constant 0 : i32
    %c0_i32_1 = arith.constant 0 : i32
    return %c0_i32, %c0_i32_0 : i32, i32
  }
  func.func @transform_5(%arg0: i32) -> (i32, i32) {
    %c0_i32 = arith.constant 0 : i32
    %c0_i32_0 = arith.constant 0 : i32
    %c0_i32_1 = arith.constant 0 : i32
    return %c0_i32, %c0_i32_0 : i32, i32
  }
  func.func @transform_6(%arg0: i32) -> (i32, i32, i32) {
    %c0_i32 = arith.constant 0 : i32
    %c0_i32_0 = arith.constant 0 : i32
    %c0_i32_1 = arith.constant 0 : i32
    return %c0_i32, %arg0, %c0_i32_0 : i32, i32, i32
  }
}

</mosaic_0001>

<bundles_post_ra>
// kernel: tpu_custom_call.1
= control target key start
LH: loop header
LB: loop body
LE: loop exit
PB: predicated region body
PF: predicated region fallthrough
CT: control target
= control target key end

     0   :  { %6 = vsyncpa [#allocation3], 0  ;;  %s107_s0 = inlined_call_operand.hbm [shape: f32[8,128], index: 0, kind: input, shape index: {}]   ;;  %s108_s1 = inlined_call_operand.hbm [shape: f32[8,128], index: 1, kind: output, shape index: {}]  }
   0x1   :  { %7 = vsyncpa [#allocation4], 0  ;;  %s88_s6 = smov [#allocation2]  }
   0x2   :  { %s14_s7 = sshll.u32 %s88_s6, 4  ;;  %s15_s7 = int_to_ptr.vmem [resolvable:$true] %s14_s7 }
   0x3   :  { %s52_s8 = scalar_lea.vmem %s15_s7, 128  ;;  %p57_p1 = scmp.lt.s32.totalorder %s15_s7, %s15_s7 }
   0x4   :  { %p53_p0 = scmp.ne.s32.totalorder %s15_s7, %s52_s8  ;;  %p58_p2 = scmp.lt.s32.totalorder %s52_s8, %s52_s8 }
   0x6   :  { %p59_p3 = por %p58_p2, %p57_p1 }
   0x8   :  { %p60_p4 = pnand %p59_p3, %p53_p0 }
   0xa   :  { %63 = shalt.err (!%p60_p4)
}
   0xb   :  { %17 = dma.hbm_to_vmem [thread:$0]  %s107_s0, 128, %s15_s7, [#allocation3]  }
   0xc   :  { %84 = dma.done.wait [#allocation3], 128  }
   0xd   :  { %85 = vsyncadd [#allocation3], 4294967168  ;;  %v21_v0 = vld [vmem:[#allocation2] sm:$0xff]  ;;  %s89_s11 = smov 256   ;;  %s90_s12 = smov [#allocation5]  }
   0xe   :  { %23 = vrot.lane.b32.xlu0 %v21_v0, %s89_s11  ;;  %s32_s13 = sshll.u32 %s90_s12, 4  ;;  %s33_s13 = int_to_ptr.vmem [resolvable:$true] %s32_s13 }
   0xf   :  { %s64_s14 = scalar_lea.vmem %s33_s13, 128  ;;  %p69_p6 = scmp.lt.s32.totalorder %s33_s13, %s33_s13 }
  0x10   :  { %p65_p5 = scmp.ne.s32.totalorder %s33_s13, %s64_s14  ;;  %p70_p7 = scmp.lt.s32.totalorder %s64_s14, %s64_s14 }
  0x12   :  { %p71_p8 = por %p70_p7, %p69_p6 }
  0x14   :  { %p72_p9 = pnand %p71_p8, %p65_p5 }
  0x80   :  { %v24_v1 = vpop.permute.xlu0 %23 }
  0x81   :  { %25 = vst [vmem:[#allocation5] sm:$0xff] %v24_v1 }
  0x82   :  { %75 = shalt.err (!%p72_p9)
}
  0x83   :  { %35 = dma.vmem_to_hbm [thread:$0]  %s33_s13, 128, %s108_s1, [#allocation4]  }
  0x84   :  { %86 = dma.done.wait [#allocation4], 128  }
  0x85   :  { %87 = vsyncadd [#allocation4], 4294967168 }
  0x86   :  { %39 = vsyncpa [#allocation3], 1 }
  0x87   :  { %40 = vsyncpa [#allocation4], 1 }

// kernel: tpu_custom_call.1
= control target key start
LH: loop header
LB: loop body
LE: loop exit
PB: predicated region body
PF: predicated region fallthrough
CT: control target
= control target key end

     0   :  { %v477_v2 = vmov 0   ;;  %s598_s0 = inlined_call_operand.vmem [shape: f32[32,1], index: 0, kind: input, shape index: {}]   ;;  %s599_s1 = inlined_call_operand.vmem [shape: f32[32,1], index: 1, kind: input, shape index: {}]   ;;  %s600_s2 = inlined_call_operand.vmem [shape: f32[32,32], index: 2, kind: input, shape index: {}]   ;;  %s601_s3 = inlined_call_operand.vmem [shape: f32[32,1], index: 3, kind: input, shape index: {}]   ;;  %s602_s4 = inlined_call_operand.vmem [shape: f32[4,32], index: 4, kind: input, shape index: {}]   ;;  %s603_s5 = inlined_call_operand.vmem [shape: f32[4,1], index: 5, kind: input, shape index: {}]   ;;  %s604_s6 = inlined_call_operand.hbm [shape: f32[4,8,8], index: 6, kind: output, shape index: {}]  }
   0x1   :  { %v35_v0 = vld [vmem:[%s599_s1 + $0x18] sm:$0xff]  ;;  %454 = vset.pattern.permute.xlu1 %v477_v2  ;;  %453 = vset.pattern.permute.xlu0 %v477_v2  ;;  %v30_v3 = vld [vmem:[%s598_s0 + $0x10] sm:$0xff]  ;;  %v29_v4 = vld [vmem:[%s598_s0 + $0x8] sm:$0xff] }
   0x2   :  { %v31_v1 = vld [vmem:[%s598_s0 + $0x18] sm:$0xff]  ;;  %77 = vperm.xlu1 %454, %v35_v0  }
   0x3   :  { %53 = vperm.xlu0 %453, %v31_v1  }
   0x4   :  { %11 = vsyncpa [#allocation3], 0  ;;  %v34_v5 = vld [vmem:[%s599_s1 + $0x10] sm:$0xff]  ;;  %v28_v6 = vld [vmem:[%s598_s0] sm:$0xff]  ;;  %vm116_vm0 = vcmask 261120   ;;  %v24_v15 = vlaneseq  ;;  %v478_v42 = vmov 0.0  }
   0x5   :  { %v33_v7 = vld [vmem:[%s599_s1 + $0x8] sm:$0xff]  ;;  %v32_v8 = vld [vmem:[%s599_s1] sm:$0xff]  ;;  %v95_v9 = vld [vmem:[%s601_s3 + $0x18] sm:$0xff]  ;;  %432 = vmatprep.subr.mxu1 %v478_v42  ;;  %vm479_vm1 = vmmov 0   ;;  %s480_s28 = smov 121   ;;  %s482_s29 = smov 2  }
   0x6   :  { %43 = vperm.xlu1 %454, %v29_v4   ;;  %v94_v10 = vld [vmem:[%s601_s3 + $0x10] sm:$0xff]  ;;  %v88_v11 = vld [vmem:[%s600_s2] sm:$0xff]  ;;  %v93_v12 = vld [vmem:[%s601_s3 + $0x8] sm:$0xff]  ;;  %v25_v16 = vand.u32 127, %v24_v15  ;;  %440 = vmatprep.mubr.msk.f32.mxu1 %vm479_vm1, %v478_v42  ;;  %v317_v0 = vshrl.u32 %v24_v15, 7  ;;  %s483_s30 = smov 4  }
   0x7   :  { %48 = vperm.xlu0 %453, %v30_v3   ;;  %426 = vmatprep.mubr.msk.f32.mxu0 %vm116_vm0, %v88_v11  ;;  %v92_v13 = vld [vmem:[%s601_s3] sm:$0xff]  ;;  %v89_v39 = vld [vmem:[%s600_s2 + $0x8] sm:$0xff]  ;;  %v90_v40 = vld [vmem:[%s600_s2 + $0x10] sm:$0xff]  ;;  %vm337_vm5 = vcmask 64512   ;;  %s484_s7 = smov [#allocation2]  }
   0x8   :  { %v219_v14 = vld [vmem:[%s603_s5] sm:$0xf]  ;;  %v26_v17 = vcvt.s32.f32 %v25_v16  ;;  %v91_v41 = vld [vmem:[%s600_s2 + $0x18] sm:$0xff]  ;;  %v341_v1 = vsub.s32 1, %v317_v0  ;;  %v318_v2 = vsub.s32 0, %v317_v0  ;;  %s389_s8 = sshll.u32 %s484_s7, 4  ;;  %s390_s8 = int_to_ptr.vmem [resolvable:$true] %s389_s8 }
   0x9   :  { %v218_v59 = vld [vmem:[%s602_s4] sm:$0xf]  ;;  %s481_s4 = smov 1   ;;  %s455_s9 = scalar_lea.vmem %s390_s8, 512 }
   0xa   :  { %38 = vperm.xlu1 %454, %v28_v6   ;;  %v27_v18 = vsub.f32 7.0, %v26_v17  ;;  %v371_v6 = vsub.s32 3, %v317_v0  ;;  %p456_p0 = scmp.ne.s32.totalorder %s390_s8, %s455_s9  ;;  %p460_p1 = scmp.lt.s32.totalorder %s390_s8, %s390_s8 }
   0xb   :  { %72 = vperm.xlu0 %453, %v34_v5   ;;  %p461_p2 = scmp.lt.s32.totalorder %s455_s9, %s455_s9 }
   0xd   :  { %p462_p3 = por %p461_p2, %p460_p1 }
   0xe   :  { %62 = vperm.xlu1 %454, %v32_v8  }
   0xf   :  { %67 = vperm.xlu0 %453, %v33_v7   ;;  %v356_v7 = vsub.s32 2, %v317_v0  ;;  %p463_p4 = pnand %p462_p3, %p456_p0 }
  0x12   :  { %108 = vperm.xlu1 %454, %v94_v10   ;;  %v324_v10 = vand.u32 1, %v317_v0 }
  0x13   :  { %113 = vperm.xlu0 %453, %v95_v9  }
  0x14   :  { %vm325_vm2 = vcmp.ne.s32.totalorder %v324_v10, 0 }
  0x16   :  { %98 = vperm.xlu1 %454, %v92_v13  }
  0x17   :  { %103 = vperm.xlu0 %453, %v93_v12  }
  0x1b   :  { %222 = vperm.xlu0 %453, %v219_v14  }
  0x7d   :  { %v78_v19 = vpop.permute.xlu1 %77 }
  0x7e   :  { %v54_v20 = vpop.permute.xlu0 %53 }
  0x7f   :  { %v59_v21 = vmul.f32 %v54_v20, %v27_v18 }
  0x81   :  { %v83_v22 = vadd.f32 %v78_v19, %v59_v21  ;;  %v44_v24 = vpop.permute.xlu1 %43  ;;  %v329_v19 = vand.u32 2, %v317_v0 }
  0x82   :  { %v49_v23 = vpop.permute.xlu0 %48  ;;  %v57_v30 = vmul.f32 %v44_v24, %v27_v18 }
  0x83   :  { %v87_v25 = vmax.f32 %v83_v22, 0.0  ;;  %v58_v26 = vmul.f32 %v49_v23, %v27_v18  ;;  %vm330_vm3 = vcmp.ne.s32.totalorder %v329_v19, 0 }
  0x85   :  { %418 = vmatprep.subr.mxu0 %v87_v25  ;;  %v39_v28 = vpop.permute.xlu1 %38 }
  0x86   :  { %v73_v27 = vpop.permute.xlu0 %72  ;;  %419 = vmatpush3.msra.mxu0 %v87_v25  ;;  %v56_v32 = vmul.f32 %v39_v28, %v27_v18  ;;  %v334_v28 = vand.u32 4, %v317_v0 }
  0x87   :  { %v82_v29 = vadd.f32 %v73_v27, %v58_v26 }
  0x88   :  { %vm583_vm4 = vcmp.ne.s32.totalorder %v334_v28, 0 }
  0x89   :  { %v86_v31 = vmax.f32 %v82_v29, 0.0  ;;  %v63_v34 = vpop.permute.xlu1 %62 }
  0x8a   :  { %v68_v33 = vpop.permute.xlu0 %67  ;;  %v80_v36 = vadd.f32 %v63_v34, %v56_v32 }
  0x8b   :  { %v81_v35 = vadd.f32 %v68_v33, %v57_v30  ;;  %420 = vmatprep.subr.mxu0 %v86_v31 }
  0x8c   :  { %421 = vmatpush3.msra.mxu0 %v86_v31  ;;  %v84_v38 = vmax.f32 %v80_v36, 0.0 }
  0x8d   :  { %v85_v37 = vmax.f32 %v81_v35, 0.0  ;;  %v109_v45 = vpop.permute.xlu1 %108 }
  0x8e   :  { %v114_v43 = vpop.permute.xlu0 %113 }
  0x8f   :  { %422 = vmatprep.subr.mxu0 %v85_v37 }
  0x90   :  { %423 = vmatpush3.msra.mxu0 %v85_v37 }
  0x91   :  { %424 = vmatprep.subr.mxu0 %v84_v38  ;;  %v99_v54 = vpop.permute.xlu1 %98 }
  0x92   :  { %425 = vmatpush3.msra.mxu0 %v84_v38  ;;  %v104_v49 = vpop.permute.xlu0 %103 }
  0x93   :  { %427 = vmatmul.mubr.msk.f32.vlgmr.msra.gmra.mxu0 %vm116_vm0, %v89_v39 }
  0x94   :  { %429 = vmatprep.mubr.msk.f32.mxu0 %vm116_vm0, %v90_v40 }
  0x96   :  { %v223_v60 = vpop.permute.xlu0 %222 }
  0x97   :  { %430 = vmatmul.mubr.msk.f32.gmra.mxu0 %vm116_vm0, %v91_v41 }
 0x153   :  { %v428_v44 = vpop.f32.mrf.mxu0 }
 0x154   :  { %v201_v51 = vadd.f32 %v428_v44, %v104_v49 }
 0x155   :  { %v195_v46 = vpop.f32.mrf.mxu0 }
 0x156   :  { %v196_v55 = vadd.f32 %v195_v46, %v99_v54  ;;  %v215_v57 = vmax.f32 %v201_v51, 0.0 }
 0x157   :  { %v431_v47 = vpop.f32.mrf.mxu0 }
 0x158   :  { %v211_v48 = vadd.f32 %v431_v47, %v114_v43  ;;  %v214_v58 = vmax.f32 %v196_v55, 0.0 }
 0x159   :  { %v205_v50 = vpop.f32.mrf.mxu0 }
 0x15a   :  { %v217_v52 = vmax.f32 %v211_v48, 0.0  ;;  %v206_v53 = vadd.f32 %v205_v50, %v109_v45 }
 0x15c   :  { %v216_v56 = vmax.f32 %v206_v53, 0.0  ;;  %433 = vmatpush3.msra.mxu1 %v217_v52 }
 0x15d   :  { %434 = vmatprep.subr.mxu1 %v478_v42 }
 0x15e   :  { %435 = vmatpush3.msra.mxu1 %v216_v56 }
 0x15f   :  { %436 = vmatprep.subr.mxu1 %v478_v42 }
 0x160   :  { %437 = vmatpush3.msra.mxu1 %v215_v57 }
 0x161   :  { %438 = vmatprep.subr.mxu1 %v478_v42 }
 0x162   :  { %439 = vmatpush3.msra.mxu1 %v214_v58 }
 0x163   :  { %441 = vmatmul.mubr.msk.f32.vlgmr.msra.gmra.mxu1 %vm116_vm0, %v218_v59 }
 0x223   :  { %v294_v61 = vpop.f32.mrf.mxu1 }
 0x224   :  { %v295_v62 = vadd.f32 %v294_v61, %v223_v60 }
 0x225   :  { %v442_v63 = vpop.f32.mrf.mxu1 }
 0x226   :  { %314 = vrot.lane.b32.xlu1 %v295_v62, %s480_s28 }
 0x298   :  { %v315_v3 = vpop.permute.xlu1 %314 }
 0x299   :  { %v342_v4 = vrot.slane %v315_v3, %v341_v1  ;;  %v319_v5 = vrot.slane %v315_v3, %v318_v2  ;;  %v372_v8 = vrot.slane %v315_v3, %v371_v6  ;;  %v357_v9 = vrot.slane %v315_v3, %v356_v7 }
 0x29b   :  { %343 = vrot.lane.b32.xlu1 %v342_v4, %s481_s4  ;;  %322 = vrot.lane.b32.xlu0 %v319_v5, %s481_s4 }
 0x29f   :  { %373 = vrot.lane.b32.xlu1 %v372_v8, %s481_s4  ;;  %358 = vrot.lane.b32.xlu0 %v357_v9, %s481_s4 }
 0x30d   :  { %v344_v11 = vpop.permute.xlu1 %343  ;;  %v323_v12 = vpop.permute.xlu0 %322 }
 0x30e   :  { %v345_v13 = vsel %vm325_vm2, %v344_v11, %v342_v4  ;;  %v326_v14 = vsel %vm325_vm2, %v323_v12, %v319_v5 }
 0x30f   :  { %346 = vrot.lane.b32.xlu1 %v345_v13, %s482_s29  ;;  %327 = vrot.lane.b32.xlu0 %v326_v14, %s482_s29 }
 0x311   :  { %v374_v15 = vpop.permute.xlu1 %373  ;;  %v359_v16 = vpop.permute.xlu0 %358 }
 0x312   :  { %v375_v17 = vsel %vm325_vm2, %v374_v15, %v372_v8  ;;  %v360_v18 = vsel %vm325_vm2, %v359_v16, %v357_v9 }
 0x313   :  { %376 = vrot.lane.b32.xlu1 %v375_v17, %s482_s29  ;;  %361 = vrot.lane.b32.xlu0 %v360_v18, %s482_s29 }
 0x381   :  { %v347_v20 = vpop.permute.xlu1 %346  ;;  %v328_v21 = vpop.permute.xlu0 %327 }
 0x382   :  { %v348_v22 = vsel %vm330_vm3, %v347_v20, %v345_v13  ;;  %v331_v23 = vsel %vm330_vm3, %v328_v21, %v326_v14 }
 0x383   :  { %349 = vrot.lane.b32.xlu1 %v348_v22, %s483_s30  ;;  %332 = vrot.lane.b32.xlu0 %v331_v23, %s483_s30 }
 0x385   :  { %v377_v24 = vpop.permute.xlu1 %376  ;;  %v362_v25 = vpop.permute.xlu0 %361 }
 0x386   :  { %v378_v26 = vsel %vm330_vm3, %v377_v24, %v375_v17  ;;  %v363_v27 = vsel %vm330_vm3, %v362_v25, %v360_v18 }
 0x387   :  { %379 = vrot.lane.b32.xlu1 %v378_v26, %s483_s30  ;;  %364 = vrot.lane.b32.xlu0 %v363_v27, %s483_s30 }
 0x3f5   :  { %v350_v30 = vpop.permute.xlu1 %349  ;;  %v333_v31 = vpop.permute.xlu0 %332 }
 0x3f6   :  { %v351_v32 = vsel %vm583_vm4, %v350_v30, %v348_v22  ;;  %v336_v33 = vsel %vm583_vm4, %v333_v31, %v331_v23 }
 0x3f7   :  { %353 = vst.msk [vmem:[#allocation2 + $0x8] sm:$0xff] %vm337_vm5, %v351_v32  ;;  %338 = vst.msk [vmem:[#allocation2] sm:$0xff] %vm337_vm5, %v336_v33 }
 0x3f9   :  { %v380_v34 = vpop.permute.xlu1 %379  ;;  %v365_v35 = vpop.permute.xlu0 %364 }
 0x3fa   :  { %v381_v36 = vsel %vm583_vm4, %v380_v34, %v378_v26  ;;  %v366_v37 = vsel %vm583_vm4, %v365_v35, %v363_v27 }
 0x3fb   :  { %383 = vst.msk [vmem:[#allocation2 + $0x18] sm:$0xff] %vm337_vm5, %v381_v36  ;;  %368 = vst.msk [vmem:[#allocation2 + $0x10] sm:$0xff] %vm337_vm5, %v366_v37 }
 0x3fc   :  { %466 = shalt.err (!%p463_p4)
}
 0x3fd   :  { %s485_s10 = smov 128   ;;  %s486_s11 = smov 8  }
 0x3fe   :  { %395 = dma.vmem_to_hbm [thread:$0]  %s390_s8, 512, %s604_s6, [#allocation3], %s485_s10, %s485_s10, %s486_s11  }
 0x3ff   :  { %475 = dma.done.wait [#allocation3], 512  }
 0x400   :  { %476 = vsyncadd [#allocation3], 4294966784 }
 0x401   :  { %399 = vsyncpa [#allocation3], 1 }

</bundles_post_ra>
